<compile_context>
chip_gen: v7x
topology: tpu7x:2x2x1
jax: 0.10.0
libtpu: 0.0.40
codegen_flags: <defaults>
</compile_context>

<pallas_src>
import jax
import jax.numpy as jnp
from jax.experimental import pallas as pl
from jax.experimental.pallas import tpu as pltpu

NEG_SLOPE = 0.01  # nn.LeakyReLU() default negative_slope
HID1_PAD = 128    # 64-wide first hidden layer padded to 128 lanes


# ----------------------------------------------------------------------------
# Pallas kernel: entire forward pass fused (4 matmuls + biases + 3 LeakyReLU).
# ----------------------------------------------------------------------------
def _mapping_kernel(z_ref,
                    w1_ref, b1_ref,
                    w2_ref, b2_ref,
                    w3_ref, b3_ref,
                    wo_ref, bo_ref,
                    out_ref):
    def leaky(h):
        return jnp.where(h > 0, h, NEG_SLOPE * h)

    def layer(h, w_ref, b_ref):
        # bf16 x bf16 -> f32 on the MXU; bias add stays f32.
        return jnp.dot(h.astype(jnp.bfloat16), w_ref[...],
                       preferred_element_type=jnp.float32) + b_ref[...]

    h = z_ref[...]                                   # [TB, dim_z]   f32
    h = leaky(layer(h, w1_ref, b1_ref))              # dim_z -> 128 (64 + pad)
    h = leaky(layer(h, w2_ref, b2_ref))              # 128   -> 128
    h = leaky(layer(h, w3_ref, b3_ref))              # 128   -> 256
    out_ref[...] = layer(h, wo_ref, bo_ref)          # 256   -> dim_code


def _round_up(x, m):
    return ((x + m - 1) // m) * m


def mapping_forward(z, params, *, block_b=1024):
    """z: [B, dim_z] f32  ->  latent codes [B, dim_code] f32."""
    B, dim_z = z.shape
    dim_code = params["wo"].shape[1]

    # ---- batch tile selection ------------------------------------------------
    B8 = _round_up(B, 8)
    if B8 <= 256:
        # Tiny batch: single tile, launch latency dominates anyway.
        TB = B8
    elif B8 <= block_b:
        # Medium batch: force >= 2 grid steps so v7x megacore shards the grid.
        TB = _round_up((B8 + 1) // 2, 8)
    else:
        TB = block_b
    B_pad = _round_up(B8, TB)
    if B_pad != B:
        z = jnp.pad(z, ((0, B_pad - B), (0, 0)))

    weight_ops = (
        params["w1"], params["b1"],
        params["w2"], params["b2"],
        params["w3"], params["b3"],
        params["wo"], params["bo"],
    )
    operands = (z,) + weight_ops

    # ---- BlockSpecs ------------------------------------------------------------
    # Weights/biases: constant index_map -> VMEM-resident across the batch grid.
    def resident_spec(arr):
        return pl.BlockSpec(arr.shape, lambda i: (0, 0))

    in_specs = [pl.BlockSpec((TB, dim_z), lambda i: (i, 0))]
    in_specs += [resident_spec(op) for op in weight_ops]
    out_spec = pl.BlockSpec((TB, dim_code), lambda i: (i, 0))

    # ---- per-tile VMEM budget (v7x has only 64 MiB physical) --------------------
    weight_bytes = sum(int(op.size) * op.dtype.itemsize for op in weight_ops)
    tile_bytes = (
        2 * TB * dim_z * 4          # streamed z double buffer (f32)
        + 2 * TB * dim_code * 4     # streamed out double buffer (f32)
        + 2 * weight_bytes          # resident weights (count double-buffered)
        + 4 * TB * 256 * 4          # live f32 intermediates + headroom
    )
    vmem_limit = int(min(48 * 1024 * 1024,
                         max(4 * 1024 * 1024, 2 * tile_bytes)))

    out = pl.pallas_call(
        _mapping_kernel,
        out_shape=jax.ShapeDtypeStruct((B_pad, dim_code), jnp.float32),
        grid=(B_pad // TB,),
        in_specs=in_specs,
        out_specs=out_spec,
        compiler_params=pltpu.CompilerParams(
            dimension_semantics=("parallel",),
            vmem_limit_bytes=vmem_limit,
        ),
    )(*operands)

    return out[:B]


# ----------------------------------------------------------------------------
# Parameter setup (plain JAX glue): PyTorch nn.Linear-style init.
# Weights stored transposed [in, out] in bf16; biases [1, out] in f32.
# The 64-wide first hidden layer is zero-padded to 128 (exact: padded h1
# columns are 0 after a zero bias, and padded w2 rows are 0).
# ----------------------------------------------------------------------------
def init_params(key, dim_z, dim_code):
    layer_dims = [(dim_z, 64), (64, 128), (128, 256), (256, dim_code)]
    names = ["1", "2", "3", "o"]
    raw = {}
    keys = jax.random.split(key, 2 * len(layer_dims))
    for idx, ((fan_in, fan_out), name) in enumerate(zip(layer_dims, names)):
        bound = 1.0 / (fan_in ** 0.5)
        w = jax.random.uniform(keys[2 * idx], (fan_in, fan_out),
                               minval=-bound, maxval=bound, dtype=jnp.float32)
        b = jax.random.uniform(keys[2 * idx + 1], (fan_out,),
                               minval=-bound, maxval=bound, dtype=jnp.float32)
        raw[f"w{name}"] = w
        raw[f"b{name}"] = b

    # Pad the 64-wide hidden layer to 128 lanes (zero columns / zero rows).
    pad = HID1_PAD - 64
    raw["w1"] = jnp.pad(raw["w1"], ((0, 0), (0, pad)))   # [dim_z, 128]
    raw["b1"] = jnp.pad(raw["b1"], ((0, pad),))          # [128]
    raw["w2"] = jnp.pad(raw["w2"], ((0, pad), (0, 0)))   # [128, 128]

    params = {}
    for name in ("1", "2", "3", "o"):
        params[f"w{name}"] = raw[f"w{name}"].astype(jnp.bfloat16)  # [in, out] bf16
        params[f"b{name}"] = raw[f"b{name}"][None, :]              # [1, out]  f32
    return params


def reference_forward(z, params):
    # Pure-JAX reference using the same bf16-activation / f32-accumulation math.
    h = z
    for name in ("1", "2", "3"):
        h = jnp.dot(h.astype(jnp.bfloat16), params[f"w{name}"],
                    preferred_element_type=jnp.float32) + params[f"b{name}"]
        h = jnp.where(h > 0, h, NEG_SLOPE * h)
    return jnp.dot(h.astype(jnp.bfloat16), params["wo"],
                   preferred_element_type=jnp.float32) + params["bo"]


if __name__ == "__main__":
    dim_z, dim_code, n_tissues = 32, 32, 5   # n_tissues unused by forward
    batch = 16

    key = jax.random.PRNGKey(0)
    k_params, k_z = jax.random.split(key)
    params = init_params(k_params, dim_z, dim_code)
    z = jax.random.normal(k_z, (batch, dim_z), dtype=jnp.float32)

    codes = mapping_forward(z, params)
    codes = jax.block_until_ready(codes)

    ref = reference_forward(z, params)
    assert codes.shape == (batch, dim_code), codes.shape
    assert jnp.allclose(codes, ref, atol=2e-3, rtol=2e-3), (codes, ref)

    print("KERNEL_OK")
</pallas_src>

<mosaic_0001>
module attributes {stable_mosaic.version = 11 : i64} {
  func.func @_mapping_kernel(%arg0: i32, %arg1: memref<16x32xf32, #tpu.memory_space<vmem>>, %arg2: memref<32x128xbf16, #tpu.memory_space<vmem>>, %arg3: memref<1x128xf32, #tpu.memory_space<vmem>>, %arg4: memref<128x128xbf16, #tpu.memory_space<vmem>>, %arg5: memref<1x128xf32, #tpu.memory_space<vmem>>, %arg6: memref<128x256xbf16, #tpu.memory_space<vmem>>, %arg7: memref<1x256xf32, #tpu.memory_space<vmem>>, %arg8: memref<256x32xbf16, #tpu.memory_space<vmem>>, %arg9: memref<1x32xf32, #tpu.memory_space<vmem>>, %arg10: memref<16x32xf32, #tpu.memory_space<vmem>>) attributes {dimension_semantics = [#tpu.dimension_semantics<parallel>], iteration_bounds = array<i64: 1>, scalar_prefetch = 0 : i64, scratch_operands = 0 : i64, tpu.core_type = #tpu.core_type<tc>, window_params = [{transform_indices = @transform_0, window_bounds = array<i64: 16, 32>}, {pipeline_mode = #tpu.pipeline_mode<synchronous>, transform_indices = @transform_1, window_bounds = array<i64: 32, 128>}, {pipeline_mode = #tpu.pipeline_mode<synchronous>, transform_indices = @transform_2, window_bounds = array<i64: 1, 128>}, {pipeline_mode = #tpu.pipeline_mode<synchronous>, transform_indices = @transform_3, window_bounds = array<i64: 128, 128>}, {pipeline_mode = #tpu.pipeline_mode<synchronous>, transform_indices = @transform_4, window_bounds = array<i64: 1, 128>}, {pipeline_mode = #tpu.pipeline_mode<synchronous>, transform_indices = @transform_5, window_bounds = array<i64: 128, 256>}, {pipeline_mode = #tpu.pipeline_mode<synchronous>, transform_indices = @transform_6, window_bounds = array<i64: 1, 256>}, {pipeline_mode = #tpu.pipeline_mode<synchronous>, transform_indices = @transform_7, window_bounds = array<i64: 256, 32>}, {pipeline_mode = #tpu.pipeline_mode<synchronous>, transform_indices = @transform_8, window_bounds = array<i64: 1, 32>}, {transform_indices = @transform_9, window_bounds = array<i64: 16, 32>}]} {
    %c0 = arith.constant 0 : index
    %c0_0 = arith.constant 0 : index
    %0 = vector.load %arg1[%c0, %c0_0] : memref<16x32xf32, #tpu.memory_space<vmem>>, vector<16x32xf32>
    %1 = arith.truncf %0 : vector<16x32xf32> to vector<16x32xbf16>
    %c0_1 = arith.constant 0 : index
    %c0_2 = arith.constant 0 : index
    %2 = vector.load %arg2[%c0_1, %c0_2] : memref<32x128xbf16, #tpu.memory_space<vmem>>, vector<32x128xbf16>
    %cst = arith.constant dense<0.000000e+00> : vector<16x128xf32>
    %3 = tpu.matmul %1, %2, %cst {dimension_numbers = #tpu.dot_dimension_numbers<[1], [0], [0], [1], [0, 0, 1, 1], [], []>} : vector<16x32xbf16>, vector<32x128xbf16>, vector<16x128xf32> -> vector<16x128xf32>
    %c0_3 = arith.constant 0 : index
    %c0_4 = arith.constant 0 : index
    %4 = vector.load %arg3[%c0_3, %c0_4] : memref<1x128xf32, #tpu.memory_space<vmem>>, vector<1x128xf32>
    %5 = vector.broadcast %4 : vector<1x128xf32> to vector<16x128xf32>
    %6 = arith.addf %3, %5 : vector<16x128xf32>
    %cst_5 = arith.constant 0.000000e+00 : f32
    %7 = vector.broadcast %cst_5 : f32 to vector<16x128xf32>
    %8 = arith.cmpf ogt, %6, %7 : vector<16x128xf32>
    %cst_6 = arith.constant 0.00999999977 : f32
    %9 = vector.broadcast %cst_6 : f32 to vector<16x128xf32>
    %10 = arith.mulf %9, %6 : vector<16x128xf32>
    %11 = arith.select %8, %6, %10 : vector<16x128xi1>, vector<16x128xf32>
    %12 = arith.truncf %11 : vector<16x128xf32> to vector<16x128xbf16>
    %c0_7 = arith.constant 0 : index
    %c0_8 = arith.constant 0 : index
    %13 = vector.load %arg4[%c0_7, %c0_8] : memref<128x128xbf16, #tpu.memory_space<vmem>>, vector<128x128xbf16>
    %cst_9 = arith.constant dense<0.000000e+00> : vector<16x128xf32>
    %14 = tpu.matmul %12, %13, %cst_9 {dimension_numbers = #tpu.dot_dimension_numbers<[1], [0], [0], [1], [0, 0, 1, 1], [], []>} : vector<16x128xbf16>, vector<128x128xbf16>, vector<16x128xf32> -> vector<16x128xf32>
    %c0_10 = arith.constant 0 : index
    %c0_11 = arith.constant 0 : index
    %15 = vector.load %arg5[%c0_10, %c0_11] : memref<1x128xf32, #tpu.memory_space<vmem>>, vector<1x128xf32>
    %16 = vector.broadcast %15 : vector<1x128xf32> to vector<16x128xf32>
    %17 = arith.addf %14, %16 : vector<16x128xf32>
    %cst_12 = arith.constant 0.000000e+00 : f32
    %18 = vector.broadcast %cst_12 : f32 to vector<16x128xf32>
    %19 = arith.cmpf ogt, %17, %18 : vector<16x128xf32>
    %cst_13 = arith.constant 0.00999999977 : f32
    %20 = vector.broadcast %cst_13 : f32 to vector<16x128xf32>
    %21 = arith.mulf %20, %17 : vector<16x128xf32>
    %22 = arith.select %19, %17, %21 : vector<16x128xi1>, vector<16x128xf32>
    %23 = arith.truncf %22 : vector<16x128xf32> to vector<16x128xbf16>
    %c0_14 = arith.constant 0 : index
    %c0_15 = arith.constant 0 : index
    %24 = vector.load %arg6[%c0_14, %c0_15] : memref<128x256xbf16, #tpu.memory_space<vmem>>, vector<128x256xbf16>
    %cst_16 = arith.constant dense<0.000000e+00> : vector<16x256xf32>
    %25 = tpu.matmul %23, %24, %cst_16 {dimension_numbers = #tpu.dot_dimension_numbers<[1], [0], [0], [1], [0, 0, 1, 1], [], []>} : vector<16x128xbf16>, vector<128x256xbf16>, vector<16x256xf32> -> vector<16x256xf32>
    %c0_17 = arith.constant 0 : index
    %c0_18 = arith.constant 0 : index
    %26 = vector.load %arg7[%c0_17, %c0_18] : memref<1x256xf32, #tpu.memory_space<vmem>>, vector<1x256xf32>
    %27 = vector.broadcast %26 : vector<1x256xf32> to vector<16x256xf32>
    %28 = arith.addf %25, %27 : vector<16x256xf32>
    %cst_19 = arith.constant 0.000000e+00 : f32
    %29 = vector.broadcast %cst_19 : f32 to vector<16x256xf32>
    %30 = arith.cmpf ogt, %28, %29 : vector<16x256xf32>
    %cst_20 = arith.constant 0.00999999977 : f32
    %31 = vector.broadcast %cst_20 : f32 to vector<16x256xf32>
    %32 = arith.mulf %31, %28 : vector<16x256xf32>
    %33 = arith.select %30, %28, %32 : vector<16x256xi1>, vector<16x256xf32>
    %34 = arith.truncf %33 : vector<16x256xf32> to vector<16x256xbf16>
    %c0_21 = arith.constant 0 : index
    %c0_22 = arith.constant 0 : index
    %35 = vector.load %arg8[%c0_21, %c0_22] : memref<256x32xbf16, #tpu.memory_space<vmem>>, vector<256x32xbf16>
    %cst_23 = arith.constant dense<0.000000e+00> : vector<16x32xf32>
    %36 = tpu.matmul %34, %35, %cst_23 {dimension_numbers = #tpu.dot_dimension_numbers<[1], [0], [0], [1], [0, 0, 1, 1], [], []>} : vector<16x256xbf16>, vector<256x32xbf16>, vector<16x32xf32> -> vector<16x32xf32>
    %c0_24 = arith.constant 0 : index
    %c0_25 = arith.constant 0 : index
    %37 = vector.load %arg9[%c0_24, %c0_25] : memref<1x32xf32, #tpu.memory_space<vmem>>, vector<1x32xf32>
    %38 = vector.broadcast %37 : vector<1x32xf32> to vector<16x32xf32>
    %39 = arith.addf %36, %38 : vector<16x32xf32>
    %c0_26 = arith.constant 0 : index
    %c0_27 = arith.constant 0 : index
    %40 = vector.load %arg10[%c0_26, %c0_27] : memref<16x32xf32, #tpu.memory_space<vmem>>, vector<16x32xf32>
    tpu.vector_store %arg10[%c0_26, %c0_27], %39 {strides = array<i32>} : memref<16x32xf32, #tpu.memory_space<vmem>>, vector<16x32xf32>,
    return
  }
  func.func @transform_0(%arg0: i32) -> (i32, i32) {
    %c0_i32 = arith.constant 0 : i32
    %c0_i32_0 = arith.constant 0 : i32
    return %arg0, %c0_i32 : i32, i32
  }
  func.func @transform_1(%arg0: i32) -> (i32, i32) {
    %c0_i32 = arith.constant 0 : i32
    %c0_i32_0 = arith.constant 0 : i32
    %c0_i32_1 = arith.constant 0 : i32
    return %c0_i32, %c0_i32_0 : i32, i32
  }
  func.func @transform_2(%arg0: i32) -> (i32, i32) {
    %c0_i32 = arith.constant 0 : i32
    %c0_i32_0 = arith.constant 0 : i32
    %c0_i32_1 = arith.constant 0 : i32
    return %c0_i32, %c0_i32_0 : i32, i32
  }
  func.func @transform_3(%arg0: i32) -> (i32, i32) {
    %c0_i32 = arith.constant 0 : i32
    %c0_i32_0 = arith.constant 0 : i32
    %c0_i32_1 = arith.constant 0 : i32
    return %c0_i32, %c0_i32_0 : i32, i32
  }
  func.func @transform_4(%arg0: i32) -> (i32, i32) {
    %c0_i32 = arith.constant 0 : i32
    %c0_i32_0 = arith.constant 0 : i32
    %c0_i32_1 = arith.constant 0 : i32
    return %c0_i32, %c0_i32_0 : i32, i32
  }
  func.func @transform_5(%arg0: i32) -> (i32, i32) {
    %c0_i32 = arith.constant 0 : i32
    %c0_i32_0 = arith.constant 0 : i32
    %c0_i32_1 = arith.constant 0 : i32
    return %c0_i32, %c0_i32_0 : i32, i32
  }
  func.func @transform_6(%arg0: i32) -> (i32, i32) {
    %c0_i32 = arith.constant 0 : i32
    %c0_i32_0 = arith.constant 0 : i32
    %c0_i32_1 = arith.constant 0 : i32
    return %c0_i32, %c0_i32_0 : i32, i32
  }
  func.func @transform_7(%arg0: i32) -> (i32, i32) {
    %c0_i32 = arith.constant 0 : i32
    %c0_i32_0 = arith.constant 0 : i32
    %c0_i32_1 = arith.constant 0 : i32
    return %c0_i32, %c0_i32_0 : i32, i32
  }
  func.func @transform_8(%arg0: i32) -> (i32, i32) {
    %c0_i32 = arith.constant 0 : i32
    %c0_i32_0 = arith.constant 0 : i32
    %c0_i32_1 = arith.constant 0 : i32
    return %c0_i32, %c0_i32_0 : i32, i32
  }
  func.func @transform_9(%arg0: i32) -> (i32, i32) {
    %c0_i32 = arith.constant 0 : i32
    %c0_i32_0 = arith.constant 0 : i32
    return %arg0, %c0_i32 : i32, i32
  }
}

</mosaic_0001>

<bundles_post_ra>
// kernel: tpu_custom_call.1
= control target key start
LH: loop header
LB: loop body
LE: loop exit
PB: predicated region body
PF: predicated region fallthrough
CT: control target
= control target key end

     0   :  { %14 = vsyncpa [#allocation3], 0  ;;  %s1026_s0 = inlined_call_operand.vmem [shape: f32[16,32], index: 0, kind: input, shape index: {}]   ;;  %s1027_s1 = inlined_call_operand.vmem [shape: bf16[32,128], index: 1, kind: input, shape index: {}]   ;;  %s1028_s2 = inlined_call_operand.vmem [shape: f32[1,128], index: 2, kind: input, shape index: {}]   ;;  %s1029_s3 = inlined_call_operand.hbm [shape: bf16[128,128], index: 3, kind: input, shape index: {}]   ;;  %s1030_s4 = inlined_call_operand.vmem [shape: f32[1,128], index: 4, kind: input, shape index: {}]   ;;  %s1031_s5 = inlined_call_operand.vmem [shape: bf16[128,256], index: 5, kind: input, shape index: {}]   ;;  %s1032_s6 = inlined_call_operand.vmem [shape: f32[1,256], index: 6, kind: input, shape index: {}]   ;;  %s1033_s7 = inlined_call_operand.vmem [shape: bf16[256,32], index: 7, kind: input, shape index: {}]   ;;  %s1034_s8 = inlined_call_operand.vmem [shape: f32[1,32], index: 8, kind: input, shape index: {}]   ;;  %s1035_s9 = inlined_call_operand.hbm [shape: f32[16,32], index: 9, kind: output, shape index: {}]  }
   0x1   :  { %15 = vsyncpa [#allocation4], 0  ;;  %s820_s30 = smov [#allocation2]   ;;  %s772_s13 = scalar_lea.hbm %s1029_s3, 1024 }
   0x2   :  { %s27_s10 = sshll.u32 %s820_s30, 4  ;;  %p773_p0 = scmp.ne.s32.totalorder %s1029_s3, %s772_s13  ;;  %s28_s10 = int_to_ptr.vmem [resolvable:$true] %s27_s10 }
   0x3   :  { %p776_p1 = scmp.lt.u32.totalorder %s772_s13, %s1029_s3 }
   0x5   :  { %p778_p2 = pnand %p776_p1, %p773_p0 }
   0x7   :  { %781 = shalt.err (!%p778_p2)
}
   0x8   :  { %s782_s18 = scalar_lea.vmem %s28_s10, 1024  ;;  %p787_p4 = scmp.lt.s32.totalorder %s28_s10, %s28_s10 }
   0x9   :  { %p783_p3 = scmp.ne.s32.totalorder %s28_s10, %s782_s18  ;;  %p788_p5 = scmp.lt.s32.totalorder %s782_s18, %s782_s18 }
   0xb   :  { %p789_p6 = por %p788_p5, %p787_p4 }
   0xd   :  { %p790_p7 = pnand %p789_p6, %p783_p3 }
   0xf   :  { %793 = shalt.err (!%p790_p7)
}
  0x10   :  { %s821_s19 = smov 64   ;;  %s822_s20 = smov 4  }
  0x11   :  { %33 = dma.hbm_to_vmem [thread:$0]  %s1029_s3, 1024, %s28_s10, [#allocation3], %s821_s19, %s821_s19, %s822_s20  }
  0x12   :  { %816 = dma.done.wait [#allocation3], 1024  }
  0x13   :  { %817 = vsyncadd [#allocation3], 4294966272  ;;  %v823_v0 = vmov 0.0   ;;  %vm824_vm0 = vmmov 0   ;;  %v722_v1 = vld [vmem:[%s1027_s1] sm:$0xff]   ;;  %v723_v2 = vld [vmem:[%s1027_s1 + $0x8] sm:$0xff]  }
  0x14   :  { %685 = vmatprep.subr.bf16.mxu0 %v823_v0  ;;  %689 = vmatprep.mubr.msk.bf16.mxu0 %vm824_vm0, %v823_v0  ;;  %v48_v3 = vld [vmem:[%s1026_s0] sm:$0xff]  ;;  %v49_v4 = vld [vmem:[%s1026_s0 + $0x8] sm:$0xff]  ;;  %vm74_vm1 = vcmask 261120   ;;  %v726_v8 = vld [vmem:[#allocation2 + $0x10] sm:$0xff]   ;;  %v825_v42 = vmov 0   ;;  %s826_s24 = smov [#allocation5]  }
  0x15   :  { %693 = vmatprep.subr.bf16.mxu1 %v823_v0  ;;  %709 = vmatprep.mubr.msk.bf16.mxu1 %vm824_vm0, %v823_v0  ;;  %v724_v5 = vld [vmem:[#allocation2] sm:$0xff]   ;;  %v50_v6 = vpack.c.bf16 %v49_v4, %v48_v3  ;;  %v725_v7 = vld [vmem:[#allocation2 + $0x8] sm:$0xff]   ;;  %v727_v9 = vld [vmem:[#allocation2 + $0x18] sm:$0xff]   ;;  %s593_s25 = sshll.u32 %s826_s24, 4  ;;  %s594_s25 = int_to_ptr.vmem [resolvable:$true] %s593_s25 }
  0x16   :  { %686 = vmatpush3.bf16.msra.mxu0 %v722_v1  ;;  %694 = vmatpush3.bf16.msra.mxu1 %v724_v5  ;;  %v728_v10 = vld [vmem:[#allocation2 + $0x20] sm:$0xff]   ;;  %v729_v11 = vld [vmem:[#allocation2 + $0x28] sm:$0xff]   ;;  %v730_v12 = vld [vmem:[#allocation2 + $0x30] sm:$0xff]   ;;  %s794_s26 = scalar_lea.vmem %s594_s25, 256  ;;  %p799_p9 = scmp.lt.s32.totalorder %s594_s25, %s594_s25 }
  0x17   :  { %687 = vmatprep.subr.bf16.mxu0 %v823_v0  ;;  %695 = vmatprep.subr.bf16.mxu1 %v823_v0  ;;  %v731_v13 = vld [vmem:[#allocation2 + $0x38] sm:$0xff]   ;;  %v732_v14 = vld [vmem:[%s1031_s5] ss:$8 sps:$4 sm:$0xff]   ;;  %v734_v15 = vld [vmem:[%s1031_s5 + $0x4] ss:$8 sps:$4 sm:$0xff]   ;;  %p795_p8 = scmp.ne.s32.totalorder %s594_s25, %s794_s26  ;;  %p800_p10 = scmp.lt.s32.totalorder %s794_s26, %s794_s26 }
  0x18   :  { %v737_v16 = vld [vmem:[%s1031_s5 + $0x14] ss:$8 sps:$4 sm:$0xff]   ;;  %v735_v17 = vld [vmem:[%s1031_s5 + $0x10] ss:$8 sps:$4 sm:$0xff]   ;;  %v740_v18 = vld [vmem:[%s1031_s5 + $0x24] ss:$8 sps:$4 sm:$0xff]  }
  0x19   :  { %v738_v19 = vld [vmem:[%s1031_s5 + $0x20] ss:$8 sps:$4 sm:$0xff]   ;;  %v743_v20 = vld [vmem:[%s1031_s5 + $0x34] ss:$8 sps:$4 sm:$0xff]   ;;  %v741_v21 = vld [vmem:[%s1031_s5 + $0x30] ss:$8 sps:$4 sm:$0xff]   ;;  %p801_p11 = por %p800_p10, %p799_p9 }
  0x1a   :  { %688 = vmatpush3.bf16.msra.mxu0 %v723_v2  ;;  %696 = vmatpush3.bf16.msra.mxu1 %v725_v7  ;;  %v746_v22 = vld [vmem:[%s1031_s5 + $0x44] ss:$8 sps:$4 sm:$0xff]   ;;  %v744_v23 = vld [vmem:[%s1031_s5 + $0x40] ss:$8 sps:$4 sm:$0xff]   ;;  %v749_v24 = vld [vmem:[%s1031_s5 + $0x54] ss:$8 sps:$4 sm:$0xff]   ;;  %v263_v7 = vlaneseq }
  0x1b   :  { %697 = vmatprep.subr.bf16.mxu1 %v823_v0  ;;  %353 = vmatprep.subr.bf16.mxu0 %v734_v15  ;;  %v747_v25 = vld [vmem:[%s1031_s5 + $0x50] ss:$8 sps:$4 sm:$0xff]   ;;  %v605_v26 = vld [vmem:[%s1028_s2] ss:$0 sm:$0xff]  ;;  %v752_v38 = vld [vmem:[%s1031_s5 + $0x64] ss:$8 sps:$4 sm:$0xff]   ;;  %p802_p12 = pnand %p801_p11, %p795_p8 }
  0x1c   :  { %v750_v39 = vld [vmem:[%s1031_s5 + $0x60] ss:$8 sps:$4 sm:$0xff]   ;;  %v755_v40 = vld [vmem:[%s1031_s5 + $0x74] ss:$8 sps:$4 sm:$0xff]   ;;  %v753_v41 = vld [vmem:[%s1031_s5 + $0x70] ss:$8 sps:$4 sm:$0xff]  }
  0x1d   :  { %690 = vmatmul.mubr.msk.bf16.vlgmr.msra.gmra.mrb[0].mxu0 %vm74_vm1, %v50_v6  ;;  %v756_v43 = vld [vmem:[%s1033_s7 + $0x40] sm:$0xff]   ;;  %v758_v45 = vld [vmem:[%s1033_s7 + $0x48] sm:$0xff]   ;;  %v760_v47 = vld [vmem:[%s1033_s7 + $0x50] sm:$0xff]  }
  0x1e   :  { %698 = vmatpush3.bf16.msra.mxu1 %v726_v8  ;;  %354 = vmatpush1.bf16.msra.mxu0 %v732_v14  ;;  %v757_v44 = vld [vmem:[%s1033_s7] sm:$0xff]   ;;  %v759_v46 = vld [vmem:[%s1033_s7 + $0x8] sm:$0xff]   ;;  %v761_v48 = vld [vmem:[%s1033_s7 + $0x10] sm:$0xff]   ;;  %v264_v8 = vshrl.u32 %v263_v7, 7 }
  0x1f   :  { %699 = vmatprep.subr.bf16.mxu1 %v823_v0  ;;  %355 = vmatprep.subr.bf16.mxu0 %v737_v16  ;;  %v762_v49 = vld [vmem:[%s1033_s7 + $0x58] sm:$0xff]   ;;  %v764_v51 = vld [vmem:[%s1033_s7 + $0x60] sm:$0xff]   ;;  %v766_v1 = vld [vmem:[%s1033_s7 + $0x68] sm:$0xff]  }
  0x20   :  { %385 = vmatprep.mubr.bf16.mxu0 %v825_v42  ;;  %v763_v50 = vld [vmem:[%s1033_s7 + $0x18] sm:$0xff]   ;;  %v765_v52 = vld [vmem:[%s1033_s7 + $0x20] sm:$0xff]   ;;  %v767_v2 = vld [vmem:[%s1033_s7 + $0x28] sm:$0xff]  }
  0x21   :  { %v609_v53 = vld [vmem:[%s1030_s4] ss:$0 sm:$0xff]  ;;  %v768_v3 = vld [vmem:[%s1033_s7 + $0x70] sm:$0xff]   ;;  %v770_v5 = vld [vmem:[%s1033_s7 + $0x78] sm:$0xff]  }
  0x22   :  { %700 = vmatpush3.bf16.msra.mxu1 %v727_v9  ;;  %356 = vmatpush1.bf16.msra.mxu0 %v735_v17  ;;  %v769_v4 = vld [vmem:[%s1033_s7 + $0x30] sm:$0xff]   ;;  %v771_v6 = vld [vmem:[%s1033_s7 + $0x38] sm:$0xff]   ;;  %v265_v9 = vsub.s32 0, %v264_v8 }
  0x23   :  { %701 = vmatprep.subr.bf16.mxu1 %v823_v0  ;;  %357 = vmatprep.subr.bf16.mxu0 %v740_v18 }
  0x26   :  { %702 = vmatpush3.bf16.msra.mxu1 %v728_v10  ;;  %358 = vmatpush1.bf16.msra.mxu0 %v738_v19  ;;  %v261_v10 = vld [vmem:[%s1032_s6] sm:$0x3] }
  0x27   :  { %703 = vmatprep.subr.bf16.mxu1 %v823_v0  ;;  %359 = vmatprep.subr.bf16.mxu0 %v743_v20 }
  0x2a   :  { %704 = vmatpush3.bf16.msra.mxu1 %v729_v11  ;;  %360 = vmatpush1.bf16.msra.mxu0 %v741_v21  ;;  %v269_v11 = vsub.s32 1, %v264_v8 }
  0x2b   :  { %705 = vmatprep.subr.bf16.mxu1 %v823_v0  ;;  %361 = vmatprep.subr.bf16.mxu0 %v746_v22 }
  0x2e   :  { %706 = vmatpush3.bf16.msra.mxu1 %v730_v12  ;;  %362 = vmatpush1.bf16.msra.mxu0 %v744_v23  ;;  %v266_v12 = vrot.slane %v261_v10, %v265_v9 }
  0x2f   :  { %707 = vmatprep.subr.bf16.mxu1 %v823_v0  ;;  %363 = vmatprep.subr.bf16.mxu0 %v749_v24 }
  0x32   :  { %708 = vmatpush3.bf16.msra.mxu1 %v731_v13  ;;  %364 = vmatpush1.bf16.msra.mxu0 %v747_v25  ;;  %v270_v13 = vrot.slane %v261_v10, %v269_v11 }
  0x33   :  { %365 = vmatprep.subr.bf16.mxu0 %v752_v38  ;;  %663 = vmatprep.subr.bf16.mxu1 %v756_v43 }
  0x36   :  { %366 = vmatpush1.bf16.msra.mxu0 %v750_v39 }
  0x37   :  { %367 = vmatprep.subr.bf16.mxu0 %v755_v40 }
  0x3a   :  { %368 = vmatpush1.bf16.msra.mxu0 %v753_v41 }
  0xf0   :  { %v112_v27 = vpop.f32.mrb[0].mxu0 }
  0xf1   :  { %v113_v28 = vadd.f32 %v605_v26, %v112_v27  ;;  %v691_v29 = vpop.f32.mrb[1].mxu0 }
  0xf2   :  { %v115_v30 = vpop.f32.mrb[2].mxu0 }
  0xf3   :  { %v121_v31 = vmul.f32 0.01, %v113_v28  ;;  %v116_v32 = vadd.f32 %v605_v26, %v115_v30  ;;  %v692_v33 = vpop.f32.mrb[3].mxu0  ;;  %vm119_vm2 = vcmp.gt.f32.partialorder %v113_v28, 0.0 }
  0xf4   :  { %v634_v33 = vld [vmem:[%s1034_s8] ss:$0 sm:$0xff] }
  0xf5   :  { %vm120_vm3 = vcmp.gt.f32.partialorder %v116_v32, 0.0  ;;  %v122_v34 = vmul.f32 0.01, %v116_v32  ;;  %v123_v35 = vsel %vm119_vm2, %v113_v28, %v121_v31 }
  0xf7   :  { %v124_v36 = vsel %vm120_vm3, %v116_v32, %v122_v34 }
  0xf8   :  { %v125_v37 = vpack.c.bf16 %v124_v36, %v123_v35 }
  0xfa   :  { %710 = vmatmul.mubr.bf16.vlgmr.msra.gmra.mrb[0].mxu1 %v125_v37 }
  0xfb   :  { %664 = vmatpush3.bf16.msra.mxu1 %v757_v44 }
  0xfc   :  { %665 = vmatprep.subr.bf16.mxu1 %v758_v45 }
  0xff   :  { %666 = vmatpush3.bf16.msra.mxu1 %v759_v46 }
 0x100   :  { %667 = vmatprep.subr.bf16.mxu1 %v760_v47 }
 0x103   :  { %668 = vmatpush3.bf16.msra.mxu1 %v761_v48 }
 0x104   :  { %669 = vmatprep.subr.bf16.mxu1 %v762_v49 }
 0x107   :  { %670 = vmatpush3.bf16.msra.mxu1 %v763_v50 }
 0x108   :  { %671 = vmatprep.subr.bf16.mxu1 %v764_v51 }
 0x10b   :  { %672 = vmatpush3.bf16.msra.mxu1 %v765_v52 }
 0x10c   :  { %673 = vmatprep.subr.bf16.mxu1 %v766_v1 }
 0x10f   :  { %674 = vmatpush3.bf16.msra.mxu1 %v767_v2 }
 0x110   :  { %675 = vmatprep.subr.bf16.mxu1 %v768_v3 }
 0x113   :  { %676 = vmatpush3.bf16.msra.mxu1 %v769_v4 }
 0x114   :  { %677 = vmatprep.subr.bf16.mxu1 %v770_v5 }
 0x117   :  { %678 = vmatpush3.bf16.msra.mxu1 %v771_v6 }
 0x1cd   :  { %v231_v54 = vpop.f32.mrb[0].mxu1 }
 0x1ce   :  { %v232_v55 = vadd.f32 %v609_v53, %v231_v54  ;;  %v711_v56 = vpop.f32.mrb[1].mxu1 }
 0x1cf   :  { %v234_v57 = vpop.f32.mrb[2].mxu1 }
 0x1d0   :  { %v240_v58 = vmul.f32 0.01, %v232_v55  ;;  %v235_v59 = vadd.f32 %v609_v53, %v234_v57  ;;  %v712_v60 = vpop.f32.mrb[3].mxu1  ;;  %vm238_vm4 = vcmp.gt.f32.partialorder %v232_v55, 0.0 }
 0x1d2   :  { %vm239_vm5 = vcmp.gt.f32.partialorder %v235_v59, 0.0  ;;  %v241_v61 = vmul.f32 0.01, %v235_v59  ;;  %v242_v62 = vsel %vm238_vm4, %v232_v55, %v240_v58 }
 0x1d4   :  { %v243_v63 = vsel %vm239_vm5, %v235_v59, %v241_v61 }
 0x1d5   :  { %v244_v0 = vpack.c.bf16 %v243_v63, %v242_v62 }
 0x1d7   :  { %386 = vmatmul.mubr.bf16.vlgmr.msra.gmra.mrb[4].mxu0 %v244_v0 }
 0x2aa   :  { %v387_v14 = vpop.f32.mrb[4].mxu0 }
 0x2ab   :  { %v388_v15 = vadd.f32 %v387_v14, %v266_v12  ;;  %v389_v16 = vpop.f32.mrb[5].mxu0 }
 0x2ac   :  { %v390_v17 = vadd.f32 %v389_v16, %v270_v13  ;;  %v391_v18 = vpop.f32.mrb[6].mxu0 }
 0x2ad   :  { %v400_v19 = vmul.f32 0.01, %v388_v15  ;;  %v392_v20 = vadd.f32 %v391_v18, %v266_v12  ;;  %v393_v21 = vpop.f32.mrb[7].mxu0  ;;  %vm396_vm6 = vcmp.gt.f32.partialorder %v388_v15, 0.0 }
 0x2ae   :  { %v401_v22 = vmul.f32 0.01, %v390_v17  ;;  %v394_v23 = vadd.f32 %v393_v21, %v270_v13  ;;  %vm397_vm7 = vcmp.gt.f32.partialorder %v390_v17, 0.0 }
 0x2af   :  { %vm398_vm8 = vcmp.gt.f32.partialorder %v392_v20, 0.0  ;;  %v402_v24 = vmul.f32 0.01, %v392_v20  ;;  %v404_v26 = vsel %vm396_vm6, %v388_v15, %v400_v19 }
 0x2b0   :  { %vm399_vm9 = vcmp.gt.f32.partialorder %v394_v23, 0.0  ;;  %v403_v25 = vmul.f32 0.01, %v394_v23  ;;  %v405_v29 = vsel %vm397_vm7, %v390_v17, %v401_v22 }
 0x2b1   :  { %v406_v27 = vsel %vm398_vm8, %v392_v20, %v402_v24 }
 0x2b2   :  { %v408_v28 = vpack.c.bf16 %v406_v27, %v404_v26  ;;  %v407_v30 = vsel %vm399_vm9, %v394_v23, %v403_v25 }
 0x2b3   :  { %v409_v31 = vpack.c.bf16 %v407_v30, %v405_v29 }
 0x2b5   :  { %577 = vmatprep.mubr.bf16.mxu1 %v409_v31 }
 0x2b6   :  { %578 = vmatmul.mubr.bf16.vlgmr.msra.gmra.mrb[4].mxu1 %v408_v28 }
 0x389   :  { %v679_v32 = vpop.f32.mrb[4].mxu1 }
 0x38a   :  { %v680_v34 = vpop.f32.mrb[5].mxu1 }
 0x38b   :  { %v681_v35 = vadd.f32 %v680_v34, %v679_v32  ;;  %v682_v36 = vpop.f32.mrb[6].mxu1 }
 0x38c   :  { %v683_v37 = vpop.f32.mrb[7].mxu1 }
 0x38d   :  { %v580_v38 = vadd.f32 %v681_v35, %v634_v33  ;;  %v684_v39 = vadd.f32 %v683_v37, %v682_v36 }
 0x38f   :  { %586 = vst.msk [vmem:[#allocation5] sm:$0xff] %vm74_vm1, %v580_v38  ;;  %v583_v40 = vadd.f32 %v684_v39, %v634_v33 }
 0x391   :  { %587 = vst.msk [vmem:[#allocation5 + $0x8] sm:$0xff] %vm74_vm1, %v583_v40 }
 0x392   :  { %805 = shalt.err (!%p802_p12)
}
 0x393   :  { %s806_s28 = scalar_lea.hbm %s1035_s9, 256 }
 0x394   :  { %p807_p13 = scmp.ne.s32.totalorder %s1035_s9, %s806_s28  ;;  %p810_p0 = scmp.lt.u32.totalorder %s806_s28, %s1035_s9 }
 0x396   :  { %p812_p1 = pnand %p810_p0, %p807_p13 }
 0x398   :  { %815 = shalt.err (!%p812_p1)
}
 0x399   :  { %s827_s30 = smov 128   ;;  %s828_s10 = smov 8  }
 0x39a   :  { %599 = dma.vmem_to_hbm [thread:$0]  %s594_s25, 256, %s1035_s9, [#allocation4], %s827_s30, %s827_s30, %s828_s10  }
 0x39b   :  { %818 = dma.done.wait [#allocation4], 256  }
 0x39c   :  { %819 = vsyncadd [#allocation4], 4294967040 }
 0x39d   :  { %603 = vsyncpa [#allocation3], 1 }
 0x39e   :  { %604 = vsyncpa [#allocation4], 1 }

</bundles_post_ra>
